<compile_context>
chip_gen: v6e
topology: v6e:2x2x1
jax: 0.10.0
libtpu: 0.0.40
codegen_flags: <defaults>
</compile_context>

<pallas_src>
import functools

import jax
import jax.numpy as jnp
from jax import lax
from jax.experimental import pallas as pl
from jax.experimental.pallas import tpu as pltpu


def _bigram_gather_kernel(ids_ref, table_ref, out_ref):
    # ids_ref:   (n_pad,) int32 in SMEM (scalar prefetch)
    # table_ref: (V, V_pad) f32, VMEM-resident (constant index_map => one DMA)
    # out_ref:   (T, V_pad) f32 logits tile for this grid step
    t_tokens = out_ref.shape[0]
    base = pl.program_id(0) * t_tokens

    def body(tok, carry):
        rid = ids_ref[base + tok]        # scalar token id from SMEM
        out_ref[rid * 0 + tok] = table_ref[rid]  # dynamic row copy (bit-exact)
        return carry

    lax.fori_loop(0, t_tokens, body, 0)


def pad_embedding_table(embedding):
    """Lane-pad the (V, V) table to (V, V_pad) once per model.

    Hoisted out of the forward so the padded copy is not re-materialized in
    HBM on every call (perf review item)."""
    v = embedding.shape[0]
    v_pad = 128 * pl.cdiv(v, 128)
    return jnp.zeros((v, v_pad), jnp.float32).at[:, :v].set(
        embedding.astype(jnp.float32))


@functools.partial(jax.jit, static_argnames=("vocab_size", "tile_tokens"))
def bigram_forward(idx, table, *, vocab_size, tile_tokens=512):
    """idx: any-shape int array; table: (V, V_pad) lane-padded f32 embedding.

    Returns (N, vocab_size) f32 logits with N = idx.size, matching the
    PyTorch `BigramModel.forward`."""
    v, v_pad = table.shape
    idx_flat = idx.reshape(-1).astype(jnp.int32)
    n = idx_flat.shape[0]

    # TODO(synk): PyTorch nn.Embedding raises on out-of-range token ids; here
    # they are clamped into [0, V-1] (required for memory safety of the gather).
    idx_flat = jnp.clip(idx_flat, 0, v - 1)

    # Tokens per grid step: a multiple of 8 (sublane-dense output block),
    # capped at tile_tokens (512 keeps v5e near its roofline; 256+ is enough
    # on v6e/v7x). N is padded up to a multiple of T; padded rows read row 0
    # and are dropped below.
    tile = min(tile_tokens, 8 * pl.cdiv(n, 8))
    n_pad = tile * pl.cdiv(n, tile)
    ids = jnp.zeros((n_pad,), jnp.int32).at[:n].set(idx_flat)

    table_bytes = v * v_pad * 4
    out_bytes = n_pad * v_pad * 4

    out = pl.pallas_call(
        _bigram_gather_kernel,
        out_shape=jax.ShapeDtypeStruct((n_pad, v_pad), jnp.float32),
        grid_spec=pltpu.PrefetchScalarGridSpec(
            num_scalar_prefetch=1,              # token ids -> SMEM
            grid=(n_pad // tile,),              # one tile of T tokens per step
            in_specs=[
                # Whole lane-padded table; constant block index => fetched once
                # and kept VMEM-resident across all grid steps.
                pl.BlockSpec((v, v_pad), lambda i, ids_smem: (0, 0)),
            ],
            out_specs=pl.BlockSpec((tile, v_pad), lambda i, ids_smem: (i, 0)),
        ),
        compiler_params=pltpu.CompilerParams(
            dimension_semantics=("parallel",)),   # v7x: 2 TCs split token tiles
        cost_estimate=pl.CostEstimate(
            flops=0, transcendentals=0,
            bytes_accessed=table_bytes + n_pad * 4 + out_bytes),
    )(ids, table)

    # NOTE (perf review): this slice costs one extra read+write of the logits;
    # downstream code that can mask padded columns should consume the padded
    # (n_pad, V_pad) output directly. Sliced here to match nn.Module semantics.
    return out[:n, :vocab_size]


if __name__ == "__main__":
    key = jax.random.PRNGKey(0)
    k_emb, k_idx = jax.random.split(key)

    vocab_size = 65          # e.g. char-level Shakespeare vocab
    batch, seq = 2, 8

    # nn.Embedding default init: N(0, 1)
    embedding = jax.random.normal(k_emb, (vocab_size, vocab_size),
                                  dtype=jnp.float32)
    idx = jax.random.randint(k_idx, (batch, seq), 0, vocab_size,
                             dtype=jnp.int32)

    table = pad_embedding_table(embedding)          # hoisted, once per model
    logits = bigram_forward(idx, table, vocab_size=vocab_size)
    jax.block_until_ready(logits)

    # Reference: plain-JAX embedding lookup. The in-kernel gather is a pure
    # copy, so results are bit-exact.
    ref = embedding[idx.reshape(-1)]
    assert logits.shape == (batch * seq, vocab_size)
    assert jnp.array_equal(logits, ref), "mismatch vs reference gather"

    print("KERNEL_OK")
</pallas_src>

<mosaic_0001>
module attributes {stable_mosaic.version = 11 : i64} {
  func.func @_bigram_gather_kernel(%arg0: i32, %arg1: memref<16xi32, #tpu.memory_space<smem>>, %arg2: memref<65x128xf32, #tpu.memory_space<vmem>>, %arg3: memref<16x128xf32, #tpu.memory_space<vmem>>) attributes {dimension_semantics = [#tpu.dimension_semantics<parallel>], iteration_bounds = array<i64: 1>, scalar_prefetch = 1 : i64, scratch_operands = 0 : i64, tpu.core_type = #tpu.core_type<tc>, window_params = [{pipeline_mode = #tpu.pipeline_mode<synchronous>, transform_indices = @transform_0, window_bounds = array<i64: 65, 128>}, {transform_indices = @transform_1, window_bounds = array<i64: 16, 128>}]} {
    %c16_i32 = arith.constant 16 : i32
    %0 = arith.muli %arg0, %c16_i32 : i32
    %c0_i32 = arith.constant 0 : i32
    %c16_i32_0 = arith.constant 16 : i32
    %1 = arith.addi %c0_i32, %c16_i32_0 : i32
    %c1_i32 = arith.constant 1 : i32
    scf.for %arg4 = %c0_i32 to %1 step %c1_i32  : i32 {
      %2 = arith.addi %0, %arg4 : i32
      %3 = arith.index_cast %2 : i32 to index
      %4 = memref.load %arg1[%3] : memref<16xi32, #tpu.memory_space<smem>>
      %5 = arith.index_cast %4 : i32 to index
      %c0 = arith.constant 0 : index
      %6 = vector.load %arg2[%5, %c0] : memref<65x128xf32, #tpu.memory_space<vmem>>, vector<1x128xf32>
      %7 = vector.shape_cast %6 : vector<1x128xf32> to vector<128xf32>
      %c0_i32_2 = arith.constant 0 : i32
      %8 = arith.muli %4, %c0_i32_2 : i32
      %9 = arith.addi %8, %arg4 : i32
      %10 = arith.index_cast %9 : i32 to index
      %c0_3 = arith.constant 0 : index
      %11 = vector.load %arg3[%10, %c0_3] : memref<16x128xf32, #tpu.memory_space<vmem>>, vector<1x128xf32>
      %12 = vector.shape_cast %11 : vector<1x128xf32> to vector<128xf32>
      %13 = vector.shape_cast %7 : vector<128xf32> to vector<1x128xf32>
      tpu.vector_store %arg3[%10, %c0_3], %13 {strides = array<i32>} : memref<16x128xf32, #tpu.memory_space<vmem>>, vector<1x128xf32>,
    }
    %c16_i32_1 = arith.constant 16 : i32
    return
  }
  func.func @transform_0(%arg0: i32, %arg1: memref<16xi32, #tpu.memory_space<smem>>) -> (i32, i32) {
    %c0_i32 = arith.constant 0 : i32
    %c0_i32_0 = arith.constant 0 : i32
    %c0_i32_1 = arith.constant 0 : i32
    return %c0_i32, %c0_i32_0 : i32, i32
  }
  func.func @transform_1(%arg0: i32, %arg1: memref<16xi32, #tpu.memory_space<smem>>) -> (i32, i32) {
    %c0_i32 = arith.constant 0 : i32
    %c0_i32_0 = arith.constant 0 : i32
    return %arg0, %c0_i32 : i32, i32
  }
}

</mosaic_0001>

<bundles_post_ra>
// kernel: bigram_forward.1
= control target key start
LH: loop header
LB: loop body
LE: loop exit
PB: predicated region body
PF: predicated region fallthrough
CT: control target
= control target key end

     0   :  { %s181_s0 = inlined_call_operand.vmem [shape: s32[16], index: 0, kind: input, shape index: {}]   ;;  %s182_s1 = inlined_call_operand.hbm [shape: f32[65,128], index: 1, kind: input, shape index: {}]   ;;  %s183_s2 = inlined_call_operand.hbm [shape: f32[16,128], index: 2, kind: output, shape index: {}]  }
   0x1   :  { %s7_s11 = sshll.u32 %s181_s0, 4  ;;  %s8_s11 = int_to_ptr.vmem [resolvable:$true] %s7_s11 }
   0x2   :  { %s80_s12 = scalar_lea.vmem %s8_s11, 16  ;;  %p85_p1 = scmp.lt.s32.totalorder %s8_s11, %s8_s11 }
   0x3   :  { %p81_p0 = scmp.ne.s32.totalorder %s8_s11, %s80_s12  ;;  %p86_p2 = scmp.lt.s32.totalorder %s80_s12, %s80_s12 }
   0x5   :  { %p87_p3 = por %p86_p2, %p85_p1 }
   0x7   :  { %p88_p4 = pnand %p87_p3, %p81_p0 }
   0x9   :  { %91 = shalt.err (!%p88_p4)  }
   0xa   :  { %s146_s13 = smov [#allocation3]  }
   0xb   :  { %10 = dma.vmem_to_smem %s8_s11, 16, %s146_s13, [#allocation2] }
   0xc   :  { %136 = dma.done.wait [#allocation2], 16 }
   0xd   :  { %137 = vsyncadd [#allocation2], 4294967280 }
   0xe   :  { %12 = sfence }
   0xf   :  { %13 = vsyncpa [#allocation5], 0 }
  0x10   :  { %14 = vsyncpa [#allocation6], 0  ;;  %s147_s14 = smov [#allocation4]  }
  0x11   :  { %s20_s15 = sshll.u32 %s147_s14, 4  ;;  %s21_s15 = int_to_ptr.vmem [resolvable:$true] %s20_s15 }
  0x12   :  { %s100_s16 = scalar_lea.vmem %s21_s15, 1152  ;;  %p105_p6 = scmp.lt.s32.totalorder %s21_s15, %s21_s15 }
  0x13   :  { %p101_p5 = scmp.ne.s32.totalorder %s21_s15, %s100_s16  ;;  %p106_p7 = scmp.lt.s32.totalorder %s100_s16, %s100_s16 }
  0x15   :  { %p107_p8 = por %p106_p7, %p105_p6 }
  0x17   :  { %p108_p9 = pnand %p107_p8, %p101_p5 }
  0x19   :  { %111 = shalt.err (!%p108_p9)
}
  0x1a   :  { %s148_s0 = smov 128   ;;  %s149_s17 = smov 8  }
  0x1b   :  { %26 = dma.hbm_to_vmem [thread:$0]  %s182_s1, 1152, %s21_s15, [#allocation5], %s148_s0, %s148_s0, %s149_s17  }
  0x1c   :  { %138 = dma.done.wait [#allocation5], 1152  }
  0x1d   :  { %139 = vsyncadd [#allocation5], 4294966144  ;;  %s142_s20 = smov 0  }
  0x1e LB: > { %s38_s21 = sld [smem:[#allocation3 + %s144_s20]]  ;;  %s41_s23 = scalar_lea.vmem [#allocation7], %s144_s20  ;;  %s144_s20 = sphi %s142_s20, %s36_s20  }
  0x1f   : > { %s36_s20 = sadd.s32 1, %s144_s20  }
  0x20   : > { %p33_p10 = scmp.ge.s32.totalorder %s36_s20, 16  }
  0x21   :  { %s150_s24 = smov (%p33_p10), [#allocation7]  }
  0x22   :  { %35 = sbr.rel (!%p33_p10) target bundleno = 30 (0x1e), region = 37  ;;  %s48_s25 = sshll.u32 (%p33_p10), %s150_s24, 4  ;;  %s49_s25 = int_to_ptr.vmem [resolvable:$true] %s48_s25 }
  0x23   :  { %s112_s26 = scalar_lea.vmem (%p33_p10), %s49_s25, 256  ;;  %p117_p12 = scmp.lt.s32.totalorder (%p33_p10), %s49_s25, %s49_s25 }
  0x24   : > { %s39_s22 = scalar_lea.vmem [#allocation4], %s38_s21  ;;  %p113_p11 = scmp.ne.s32.totalorder (%p33_p10), %s49_s25, %s112_s26 }
  0x25   : > { %v40_v0 = vld [vmem:[%s39_s22] sm:$0x1]  ;;  %p118_p13 = scmp.lt.s32.totalorder (%p33_p10), %s112_s26, %s112_s26 }
  0x26   : > { %42 = vst [vmem:[%s41_s23] sm:$0x1] %v40_v0 }
  0x27   :  { %p119_p0 = por %p118_p13, %p117_p12 }
  0x29   :  { %p120_p1 = pnand %p119_p0, %p113_p11 }
  0x2b   :  { %123 = shalt.err (!%p120_p1)
}
  0x2c   :  { %54 = dma.vmem_to_hbm [thread:$0]  %s49_s25, 256, %s183_s2, [#allocation6], %s148_s0, %s148_s0, %s149_s17  }
  0x2d   :  { %140 = dma.done.wait [#allocation6], 256  }
  0x2e   :  { %141 = vsyncadd [#allocation6], 4294967040 }
  0x2f   :  { %58 = vsyncpa [#allocation5], 1 }
  0x30   :  { %59 = vsyncpa [#allocation6], 1 }

</bundles_post_ra>
